<compile_context>
chip_gen: v6e
topology: v6e:2x2x1
jax: 0.10.0
libtpu: 0.0.40
codegen_flags: <defaults>
</compile_context>

<pallas_src>
import jax
import jax.numpy as jnp
from jax.experimental import pallas as pl
from jax.experimental.pallas import tpu as pltpu


def span_attention_kernel(q_ref, mask_ref, w_ref, out_ref):
    """Per-batch-tile kernel: scores = <q, w> ; masked_fill(-inf) ; softmax over L.

    q_ref:    (TB, L, D)  native dtype (f32/bf16) in VMEM
    mask_ref: (TB, L)     int32 in VMEM  (nonzero == pad)
    w_ref:    (1, 1, D)   float32 in VMEM  (Linear weight row)
    out_ref:  (TB, L)     float32 in VMEM
    """
    q = q_ref[...].astype(jnp.float32)            # (TB, L, D)  cast after load (DMA stays narrow)
    w = w_ref[...].astype(jnp.float32)            # (1, 1, D)   broadcasts against q

    # Linear(D, 1).squeeze(2) as a VPU multiply + lane (XLU) reduction -- keeps the MXU out of it.
    scores = jnp.sum(q * w, axis=-1)              # (TB, L)

    # masked_fill_(q_mask, -inf); bias omitted (softmax over axis=1 is shift-invariant).
    pad = mask_ref[...] != 0
    scores = jnp.where(pad, -jnp.inf, scores)

    # softmax over the sequence axis (lane axis of the (TB, L) tile).
    # NOTE: a fully-padded row yields NaN, identical to the PyTorch reference behavior.
    m = jnp.max(scores, axis=1, keepdims=True)
    e = jnp.exp(scores - m)
    denom = jnp.sum(e, axis=1, keepdims=True)
    out_ref[...] = (e * pl.reciprocal(denom, approx=False)).astype(out_ref.dtype)


def span_attention(q, q_mask, weight, bias=None, *, block_b=None):
    """q: (B, L, D) f32/bf16, q_mask: (B, L) bool, weight: (1, D), bias: (1,) [ignored, see below].

    The bias is accepted for API parity with nn.Linear(q_dim, 1) but is provably a no-op:
    softmax(x + b) == softmax(x) for a scalar b, and the -inf mask is applied after the bias.
    """
    B, L, D = q.shape

    if block_b is None:
        # Target ~4 MiB of q per block so double-buffering fits every generation's scoped-VMEM
        # default (16 MiB on v5e, 32 MiB on v6e/v7x) with plenty of headroom.
        row_bytes = L * D * jnp.dtype(q.dtype).itemsize
        tb = max(1, (4 * 1024 * 1024) // max(row_bytes, 1))
        if tb >= B:
            tb = B                                   # single batch block (full dim -> always legal)
        else:
            tb = max(8, (tb // 8) * 8)               # 2nd-minor of the (TB, L) blocks: multiple of 8
    else:
        tb = block_b
    grid = (pl.cdiv(B, tb),)

    mask_i32 = q_mask.astype(jnp.int32)              # dense mask kept to support arbitrary masks
    w3 = weight.reshape(1, 1, D).astype(jnp.float32)

    return pl.pallas_call(
        span_attention_kernel,
        out_shape=jax.ShapeDtypeStruct((B, L), jnp.float32),
        grid_spec=pltpu.PrefetchScalarGridSpec(
            num_scalar_prefetch=0,
            grid=grid,
            in_specs=[
                pl.BlockSpec((tb, L, D), lambda i: (i, 0, 0)),   # q   (native dtype)
                pl.BlockSpec((tb, L), lambda i: (i, 0)),         # pad mask
                pl.BlockSpec((1, 1, D), lambda i: (0, 0, 0)),    # weight row (resident)
            ],
            out_specs=pl.BlockSpec((tb, L), lambda i: (i, 0)),
        ),
        compiler_params=pltpu.CompilerParams(
            dimension_semantics=("parallel",),       # independent batch blocks -> megacore on v7x
        ),
    )(q, mask_i32, w3)


def span_attention_ref(q, q_mask, weight, bias):
    """Pure-JAX reference matching the PyTorch forward (elementwise, full f32)."""
    scores = jnp.sum(q.astype(jnp.float32) * weight[0].astype(jnp.float32), axis=-1) + bias[0]
    scores = jnp.where(q_mask, -jnp.inf, scores)
    return jax.nn.softmax(scores, axis=1)


if __name__ == "__main__":
    key = jax.random.PRNGKey(0)

    def run_case(key, B, L, D, dtype, block_b=None):
        kq, kw, kb, kl = jax.random.split(key, 4)
        q = jax.random.normal(kq, (B, L, D), dtype=jnp.float32).astype(dtype)
        lengths = jax.random.randint(kl, (B,), 1, L + 1)            # >= 1 valid token per row
        q_mask = jnp.arange(L)[None, :] >= lengths[:, None]         # True == pad
        bound = 1.0 / (D ** 0.5)
        weight = jax.random.uniform(kw, (1, D), minval=-bound, maxval=bound, dtype=jnp.float32)
        bias = jax.random.uniform(kb, (1,), minval=-bound, maxval=bound, dtype=jnp.float32)

        out = span_attention(q, q_mask, weight, bias, block_b=block_b)
        jax.block_until_ready(out)

        ref = span_attention_ref(q, q_mask, weight, bias)
        assert out.shape == (B, L)
        assert jnp.allclose(out, ref, atol=2e-5, rtol=2e-5), f"mismatch {B}x{L}x{D} {dtype}"

    k1, k2 = jax.random.split(key)
    # Module-scale shapes (batch=2, q_len=8, q_dim=32), f32, single batch block.
    run_case(k1, 2, 8, 32, jnp.float32)
    # Exercise the batch grid (4 pipelined steps), lane-dense L=128, bf16 streaming path.
    run_case(k2, 32, 128, 64, jnp.bfloat16, block_b=8)

    print("KERNEL_OK")
</pallas_src>

<mosaic_0001>
module attributes {stable_mosaic.version = 11 : i64} {
  func.func @span_attention_kernel(%arg0: i32, %arg1: memref<2x8x32xf32, #tpu.memory_space<vmem>>, %arg2: memref<2x8xi32, #tpu.memory_space<vmem>>, %arg3: memref<1x1x32xf32, #tpu.memory_space<vmem>>, %arg4: memref<2x8xf32, #tpu.memory_space<vmem>>) attributes {dimension_semantics = [#tpu.dimension_semantics<parallel>], iteration_bounds = array<i64: 1>, scalar_prefetch = 0 : i64, scratch_operands = 0 : i64, tpu.core_type = #tpu.core_type<tc>, window_params = [{transform_indices = @transform_0, window_bounds = array<i64: 2, 8, 32>}, {transform_indices = @transform_1, window_bounds = array<i64: 2, 8>}, {pipeline_mode = #tpu.pipeline_mode<synchronous>, transform_indices = @transform_2, window_bounds = array<i64: 1, 1, 32>}, {transform_indices = @transform_3, window_bounds = array<i64: 2, 8>}]} {
    %c0 = arith.constant 0 : index
    %c0_0 = arith.constant 0 : index
    %c0_1 = arith.constant 0 : index
    %0 = vector.load %arg1[%c0, %c0_0, %c0_1] : memref<2x8x32xf32, #tpu.memory_space<vmem>>, vector<2x8x32xf32>
    %c0_2 = arith.constant 0 : index
    %c0_3 = arith.constant 0 : index
    %c0_4 = arith.constant 0 : index
    %1 = vector.load %arg3[%c0_2, %c0_3, %c0_4] : memref<1x1x32xf32, #tpu.memory_space<vmem>>, vector<1x1x32xf32>
    %2 = vector.broadcast %1 : vector<1x1x32xf32> to vector<2x8x32xf32>
    %3 = arith.mulf %0, %2 : vector<2x8x32xf32>
    %cst = arith.constant dense<0.000000e+00> : vector<2x8xf32>
    %4 = vector.multi_reduction <add>, %3, %cst [2] : vector<2x8x32xf32> to vector<2x8xf32>
    %c0_5 = arith.constant 0 : index
    %c0_6 = arith.constant 0 : index
    %5 = vector.load %arg2[%c0_5, %c0_6] : memref<2x8xi32, #tpu.memory_space<vmem>>, vector<2x8xi32>
    %c0_i32 = arith.constant 0 : i32
    %6 = vector.broadcast %c0_i32 : i32 to vector<2x8xi32>
    %7 = arith.cmpi ne, %5, %6 : vector<2x8xi32>
    %cst_7 = arith.constant 0xFF800000 : f32
    %8 = vector.broadcast %cst_7 : f32 to vector<2x8xf32>
    %9 = arith.select %7, %8, %4 : vector<2x8xi1>, vector<2x8xf32>
    %cst_8 = arith.constant dense<0xFF800000> : vector<2xf32>
    %10 = vector.multi_reduction <maximumf>, %9, %cst_8 [1] : vector<2x8xf32> to vector<2xf32>
    %11 = vector.shape_cast %10 : vector<2xf32> to vector<2x1xf32>
    %12 = vector.broadcast %11 : vector<2x1xf32> to vector<2x8xf32>
    %13 = arith.subf %9, %12 : vector<2x8xf32>
    %14 = math.exp %13 : vector<2x8xf32>
    %cst_9 = arith.constant dense<0.000000e+00> : vector<2xf32>
    %15 = vector.multi_reduction <add>, %14, %cst_9 [1] : vector<2x8xf32> to vector<2xf32>
    %16 = vector.shape_cast %15 : vector<2xf32> to vector<2x1xf32>
    %17 = tpu.reciprocal %16 : vector<2x1xf32> -> vector<2x1xf32>
    %18 = vector.broadcast %17 : vector<2x1xf32> to vector<2x8xf32>
    %19 = arith.mulf %14, %18 : vector<2x8xf32>
    %c0_10 = arith.constant 0 : index
    %c0_11 = arith.constant 0 : index
    %20 = vector.load %arg4[%c0_10, %c0_11] : memref<2x8xf32, #tpu.memory_space<vmem>>, vector<2x8xf32>
    tpu.vector_store %arg4[%c0_10, %c0_11], %19 {strides = array<i32>} : memref<2x8xf32, #tpu.memory_space<vmem>>, vector<2x8xf32>,
    return
  }
  func.func @transform_0(%arg0: i32) -> (i32, i32, i32) {
    %c0_i32 = arith.constant 0 : i32
    %c0_i32_0 = arith.constant 0 : i32
    %c0_i32_1 = arith.constant 0 : i32
    return %arg0, %c0_i32, %c0_i32_0 : i32, i32, i32
  }
  func.func @transform_1(%arg0: i32) -> (i32, i32) {
    %c0_i32 = arith.constant 0 : i32
    %c0_i32_0 = arith.constant 0 : i32
    return %arg0, %c0_i32 : i32, i32
  }
  func.func @transform_2(%arg0: i32) -> (i32, i32, i32) {
    %c0_i32 = arith.constant 0 : i32
    %c0_i32_0 = arith.constant 0 : i32
    %c0_i32_1 = arith.constant 0 : i32
    %c0_i32_2 = arith.constant 0 : i32
    return %c0_i32, %c0_i32_0, %c0_i32_1 : i32, i32, i32
  }
  func.func @transform_3(%arg0: i32) -> (i32, i32) {
    %c0_i32 = arith.constant 0 : i32
    %c0_i32_0 = arith.constant 0 : i32
    return %arg0, %c0_i32 : i32, i32
  }
}

</mosaic_0001>

<bundles_post_ra>
// kernel: tpu_custom_call.1
= control target key start
LH: loop header
LB: loop body
LE: loop exit
PB: predicated region body
PF: predicated region fallthrough
CT: control target
= control target key end

     0   :  { %8 = vsyncpa [#allocation3], 0  ;;  %s222_s0 = inlined_call_operand.hbm [shape: f32[2,8,32], index: 0, kind: input, shape index: {}]   ;;  %s223_s1 = inlined_call_operand.hbm [shape: s32[2,8], index: 1, kind: input, shape index: {}]   ;;  %s224_s2 = inlined_call_operand.vmem [shape: f32[1,1,32], index: 2, kind: input, shape index: {}]   ;;  %s225_s3 = inlined_call_operand.hbm [shape: f32[2,8], index: 3, kind: output, shape index: {}]  }
   0x1   :  { %9 = vsyncpa [#allocation6], 0 }
   0x2   :  { %10 = vsyncpa [#allocation4], 0  ;;  %s182_s12 = smov [#allocation2]  }
   0x3   :  { %s16_s13 = sshll.u32 %s182_s12, 4  ;;  %s17_s13 = int_to_ptr.vmem [resolvable:$true] %s16_s13 }
   0x4   :  { %s124_s14 = scalar_lea.vmem %s17_s13, 256  ;;  %p129_p1 = scmp.lt.s32.totalorder %s17_s13, %s17_s13 }
   0x5   :  { %p125_p0 = scmp.ne.s32.totalorder %s17_s13, %s124_s14  ;;  %p130_p2 = scmp.lt.s32.totalorder %s124_s14, %s124_s14 }
   0x7   :  { %p131_p3 = por %p130_p2, %p129_p1 }
   0x9   :  { %p132_p4 = pnand %p131_p3, %p125_p0 }
   0xb   :  { %135 = shalt.err (!%p132_p4)
}
   0xc   :  { %s183_s15 = smov 128   ;;  %s184_s16 = smov 8  }
   0xd   :  { %22 = dma.hbm_to_vmem [thread:$0]  %s222_s0, 256, %s17_s13, [#allocation3], %s183_s15, %s183_s15, %s184_s16  }
   0xe   :  { %s185_s19 = smov [#allocation5]  }
   0xf   :  { %s29_s20 = sshll.u32 %s185_s19, 4  ;;  %s30_s20 = int_to_ptr.vmem [resolvable:$true] %s29_s20 }
  0x10   :  { %s144_s21 = scalar_lea.vmem %s30_s20, 32  ;;  %p149_p6 = scmp.lt.s32.totalorder %s30_s20, %s30_s20 }
  0x11   :  { %p145_p5 = scmp.ne.s32.totalorder %s30_s20, %s144_s21  ;;  %p150_p7 = scmp.lt.s32.totalorder %s144_s21, %s144_s21 }
  0x13   :  { %p151_p8 = por %p150_p7, %p149_p6 }
  0x15   :  { %p152_p9 = pnand %p151_p8, %p145_p5 }
  0x17   :  { %155 = shalt.err (!%p152_p9)
}
  0x18   :  { %32 = dma.hbm_to_vmem [thread:$0]  %s223_s1, 32, %s30_s20, [#allocation6]  }
  0x19   :  { %176 = dma.done.wait [#allocation3], 256  }
  0x1a   :  { %177 = vsyncadd [#allocation3], 4294967040 }
  0x1b   :  { %178 = dma.done.wait [#allocation6], 32  }
  0x1c   :  { %179 = vsyncadd [#allocation6], 4294967264  ;;  %v41_v0 = vld [vmem:[#allocation2] sm:$0xff]  ;;  %vm52_vm0 = vcmask 261120   ;;  %v42_v2 = vld [vmem:[#allocation2 + $0x8] sm:$0xff]  ;;  %v63_v7 = vlaneseq  ;;  %vm73_vm1 = vcmask 1041409  }
  0x1d   :  { %v106_v1 = vld [vmem:[%s224_s2] ss:$0 sm:$0xff]  ;;  %v59_v12 = vld [vmem:[#allocation5] sm:$0x3]  ;;  %vm77_vm3 = vcmask 58368   ;;  %s186_s1 = smov [#allocation7]  }
  0x1e   :  { %v50_v3 = vmul.f32 %v106_v1, %v41_v0  ;;  %v51_v4 = vmul.f32 %v106_v1, %v42_v2  ;;  %v64_v8 = vand.u32 127, %v63_v7  ;;  %v66_v9 = vshrl.u32 %v63_v7, 7  ;;  %s96_s2 = sshll.u32 %s186_s1, 4  ;;  %s97_s2 = int_to_ptr.vmem [resolvable:$true] %s96_s2 }
  0x1f   :  { %vm60_vm2 = vcmp.ne.s32.totalorder %v59_v12, 0  ;;  %s156_s25 = scalar_lea.vmem %s97_s2, 32  ;;  %p161_p11 = scmp.lt.s32.totalorder %s97_s2, %s97_s2 }
  0x20   :  { %v53_v5 = vsel %vm52_vm0, %v50_v3, 0.0  ;;  %v56_v6 = vsel %vm52_vm0, %v51_v4, 0.0  ;;  %v67_v11 = vsub.s32 %v64_v8, %v66_v9  ;;  %p157_p10 = scmp.ne.s32.totalorder %s97_s2, %s156_s25  ;;  %p162_p12 = scmp.lt.s32.totalorder %s156_s25, %s156_s25 }
  0x21   :  { %54 = vadd.xlane.f32.xlu0 %v53_v5 }
  0x22   :  { %p163_p13 = por %p162_p12, %p161_p11 }
  0x24   :  { %p164_p0 = pnand %p163_p13, %p157_p10 }
  0x25   :  { %57 = vadd.xlane.f32.xlu0 %v56_v6 }
  0xaa   :  { %v55_v10 = vpop.xlane.xlu0 %54 }
  0xab   :  { %v68_v14 = vrot.slane %v55_v10, %v67_v11 }
  0xae   :  { %v58_v13 = vpop.xlane.xlu0 %57 }
  0xaf   :  { %v72_v15 = vrot.slane %v58_v13, %v67_v11 }
  0xb1   :  { %v74_v16 = vsel %vm73_vm1, %v72_v15, %v68_v14 }
  0xb2   :  { %v76_v17 = vsel %vm60_vm2, -inf, %v74_v16 }
  0xb3   :  { %v78_v18 = vsel %vm77_vm3, %v76_v17, -inf }
  0xb4   :  { %79 = vmax.xlane.f32.xlu1 %v78_v18 }
 0x13d   :  { %v80_v19 = vpop.xlane.xlu1 %79 }
 0x13e   :  { %v81_v20 = vsub.f32 %v76_v17, %v80_v19 }
 0x140   :  { %v82_v21 = vmul.f32 1.442695, %v81_v20 }
 0x142   :  { %112 = vpow2.f32 %v82_v21 }
 0x14f   :  { %v113_v22 = vpop.eup %112 }
 0x150   :  { %v84_v23 = vsel %vm77_vm3, %v113_v22, 0.0 }
 0x151   :  { %85 = vadd.xlane.f32.xlu1 %v84_v23 }
 0x1da   :  { %v86_v24 = vpop.xlane.xlu1 %85 }
 0x1db   :  { %114 = vrcp.f32 %v86_v24 }
 0x1e8   :  { %v115_v25 = vpop.eup %114 }
 0x1e9   :  { %v88_v26 = vmul.f32 %v115_v25, %v113_v22 }
 0x1eb   :  { %89 = vst.msk [vmem:[#allocation7] sm:$0x3] %vm77_vm3, %v88_v26 }
 0x1ec   :  { %167 = shalt.err (!%p164_p0)
}
 0x1ed   :  { %99 = dma.vmem_to_hbm [thread:$0]  %s97_s2, 32, %s225_s3, [#allocation4]  }
 0x1ee   :  { %180 = dma.done.wait [#allocation4], 32  }
 0x1ef   :  { %181 = vsyncadd [#allocation4], 4294967264 }
 0x1f0   :  { %103 = vsyncpa [#allocation3], 1 }
 0x1f1   :  { %104 = vsyncpa [#allocation6], 1 }
 0x1f2   :  { %105 = vsyncpa [#allocation4], 1 }

</bundles_post_ra>
